<compile_context>
chip_gen: v7x
topology: tpu7x:2x2x1
jax: 0.10.0
libtpu: 0.0.40
codegen_flags: <defaults>
</compile_context>

<pallas_src>
import functools
import math

import jax
import jax.numpy as jnp
from jax import lax
from jax.experimental import pallas as pl
from jax.experimental.pallas import tpu as pltpu

_LANES = 128
_SUBLANES = 8
_MAX_BLOCK_ROWS = 4096   # (4096, 128) f32 = 2 MiB per input per buffer
_NUM_SPLITS = 2          # leading "parallel" axis (only used when >= 2 blocks)
_LOG2 = math.log(2.0)


def _cdiv(a, b):
    return -(-a // b)


def _round_up(a, m):
    return _cdiv(a, m) * m


def _logcosh(x):
    # Stable log(cosh(x)) for x >= 0: x + log1p(exp(-2x)) - log(2).
    # exp(-2x) <= 1 so no overflow; 2 transcendentals per element.
    return x + jnp.log1p(jnp.exp(jnp.float32(-2.0) * x)) - jnp.float32(_LOG2)


def _fold8(v):
    # (block_rows, 128) -> (8, 128) with pure VPU adds (block_rows % 8 == 0).
    r, l = v.shape
    return jnp.sum(v.reshape(r // _SUBLANES, _SUBLANES, l), axis=0)


def _logcosh_sum_kernel(a_ref, b_ref, out_ref, *, rows, block_rows, per_core,
                        boundary_block, mask_possible):
    c = pl.program_id(0)   # split index (parallel)
    i = pl.program_id(1)   # reduction over row-blocks within the split
    bi = c * per_core + i  # intended (unclamped) block index

    @pl.when(i == 0)
    def _():
        out_ref[...] = jnp.zeros_like(out_ref)

    # Upcast inside the kernel (native-dtype HBM traffic in the wrapper).
    x = jnp.abs(a_ref[...].astype(jnp.float32) -
                b_ref[...].astype(jnp.float32)) + jnp.float32(1e-16)

    if not mask_possible:
        # Every block is full and unique: branch-free fast path.
        out_ref[...] += _fold8(_logcosh(x))[None]
    else:
        if boundary_block > 0:
            # Interior blocks: no mask work at all.
            @pl.when(bi < boundary_block)
            def _():
                out_ref[...] += _fold8(_logcosh(x))[None]

        # Last (possibly ragged) block and clamped duplicate steps: row-only
        # mask.  Masking x before the transcendentals keeps NaN/Inf from
        # undefined VMEM rows out of exp/log1p; the output-side select makes
        # the masked contribution exactly zero.
        @pl.when(bi >= boundary_block)
        def _():
            row_ids = bi * block_rows + lax.broadcasted_iota(
                jnp.int32, (block_rows, _LANES), 0)
            m = row_ids < rows
            xm = jnp.where(m, x, jnp.float32(0.0))
            vm = jnp.where(m, _logcosh(xm), jnp.float32(0.0))
            out_ref[...] += _fold8(vm)[None]


def _logcosh_sum_main(a2, b2, max_block_rows):
    """Sum of logcosh(|a-b|+eps) over a lane-dense (rows, 128) slab."""
    rows = a2.shape[0]

    # Round the block up to a multiple of 32 rows (valid tile for f32/bf16/i8);
    # a block larger than the array is fine — the extra rows are masked.
    block_rows = min(max_block_rows, _round_up(rows, 32))
    nblocks = _cdiv(rows, block_rows)

    # Adaptive split: never stream a single block twice.
    num_splits = _NUM_SPLITS if nblocks >= _NUM_SPLITS else 1
    per_core = _cdiv(nblocks, num_splits)

    ragged_last = (rows % block_rows) != 0
    has_duplicates = num_splits * per_core > nblocks
    mask_possible = ragged_last or has_duplicates
    boundary_block = (nblocks - 1) if ragged_last else nblocks

    kernel = functools.partial(
        _logcosh_sum_kernel, rows=rows, block_rows=block_rows,
        per_core=per_core, boundary_block=boundary_block,
        mask_possible=mask_possible)

    # Clamp the (at most one per split) extra grid step; it is fully masked.
    def in_map(c, i):
        return (jnp.minimum(c * per_core + i, nblocks - 1), 0)

    itemsize = jnp.dtype(a2.dtype).itemsize
    partials = pl.pallas_call(
        kernel,
        out_shape=jax.ShapeDtypeStruct((num_splits, _SUBLANES, _LANES),
                                       jnp.float32),
        grid_spec=pltpu.PrefetchScalarGridSpec(
            num_scalar_prefetch=0,
            grid=(num_splits, per_core),
            in_specs=[
                pl.BlockSpec((block_rows, _LANES), in_map),
                pl.BlockSpec((block_rows, _LANES), in_map),
            ],
            out_specs=pl.BlockSpec((1, _SUBLANES, _LANES),
                                   lambda c, i: (c, 0, 0)),
        ),
        compiler_params=pltpu.CompilerParams(
            dimension_semantics=("parallel", "arbitrary"),
        ),
        cost_estimate=pl.CostEstimate(
            flops=8 * rows * _LANES,
            transcendentals=2 * rows * _LANES,
            bytes_accessed=2 * rows * _LANES * itemsize
            + num_splits * _SUBLANES * _LANES * 4,
        ),
    )(a2, b2)

    # Single tiny cross-lane reduce of the (num_splits, 8, 128) partial sums.
    return jnp.sum(partials)


def log_cosh_loss(y_t, y_prime_t, *, max_block_rows=_MAX_BLOCK_ROWS):
    """Pallas implementation of LogCoshLoss.forward (returns a scalar f32)."""
    assert y_t.shape == y_prime_t.shape
    assert max_block_rows % _SUBLANES == 0
    n_true = int(y_t.size)

    a = jnp.ravel(y_t)
    b = jnp.ravel(y_prime_t)

    n_main = (n_true // _LANES) * _LANES
    total = jnp.float32(0.0)

    if n_main < n_true:
        # <128-element tail: exact fold with plain jnp (negligible cost).
        ta = lax.dynamic_slice(a, (n_main,), (n_true - n_main,)).astype(jnp.float32)
        tb = lax.dynamic_slice(b, (n_main,), (n_true - n_main,)).astype(jnp.float32)
        total = total + jnp.sum(_logcosh(jnp.abs(ta - tb) + jnp.float32(1e-16)))

    if n_main > 0:
        if n_main == n_true:
            a_main, b_main = a, b            # no slice, reshape is free
        else:
            # TODO(synk): this prefix slice may materialize a copy for large
            # non-128-aligned inputs; acceptable vs. the old whole-array pad.
            a_main = lax.slice(a, (0,), (n_main,))
            b_main = lax.slice(b, (0,), (n_main,))
        rows = n_main // _LANES
        a2 = a_main.reshape(rows, _LANES)
        b2 = b_main.reshape(rows, _LANES)
        total = total + _logcosh_sum_main(a2, b2, max_block_rows)

    return total / jnp.float32(n_true)


def _reference(y_t, y_prime_t):
    return jnp.mean(jnp.log(jnp.cosh(jnp.abs(y_t - y_prime_t) + 1e-16)))


if __name__ == "__main__":
    key = jax.random.PRNGKey(0)
    k1, k2, k3, k4, k5, k6 = jax.random.split(key, 6)

    # Small NCHW-like regression target (128-aligned -> single kernel block).
    x_shape = (2, 4, 16, 16)
    y_t = jax.random.normal(k1, x_shape, dtype=jnp.float32)
    y_prime_t = jax.random.normal(k2, x_shape, dtype=jnp.float32)
    loss = log_cosh_loss(y_t, y_prime_t)
    jax.block_until_ready(loss)
    ref = _reference(y_t, y_prime_t)
    assert jnp.allclose(loss, ref, rtol=1e-5, atol=1e-6), (loss, ref)

    # Tiny non-128-aligned shape: wrapper-side tail path only.
    z_shape = (3, 5, 7)
    z_t = jax.random.normal(k3, z_shape, dtype=jnp.float32)
    z_prime_t = jax.random.normal(k4, z_shape, dtype=jnp.float32)
    loss2 = log_cosh_loss(z_t, z_prime_t)
    jax.block_until_ready(loss2)
    ref2 = _reference(z_t, z_prime_t)
    assert jnp.allclose(loss2, ref2, rtol=1e-5, atol=1e-6), (loss2, ref2)

    # Medium unaligned shape with a small block: exercises the multi-block
    # grid, 2-way split, unmasked fast path, ragged masked last block, clamped
    # duplicate step, and the wrapper tail fold.
    w_shape = (7, 9, 133)
    w_t = jax.random.normal(k5, w_shape, dtype=jnp.float32)
    w_prime_t = jax.random.normal(k6, w_shape, dtype=jnp.float32)
    loss3 = log_cosh_loss(w_t, w_prime_t, max_block_rows=32)
    jax.block_until_ready(loss3)
    ref3 = _reference(w_t, w_prime_t)
    assert jnp.allclose(loss3, ref3, rtol=1e-5, atol=1e-6), (loss3, ref3)

    print("KERNEL_OK")
</pallas_src>

<mosaic_0001>
module attributes {stable_mosaic.version = 11 : i64} {
  func.func @_logcosh_sum_kernel(%arg0: i32, %arg1: i32, %arg2: memref<32x128xf32, #tpu.memory_space<vmem>>, %arg3: memref<32x128xf32, #tpu.memory_space<vmem>>, %arg4: memref<1x8x128xf32, #tpu.memory_space<vmem>>) attributes {dimension_semantics = [#tpu.dimension_semantics<parallel>, #tpu.dimension_semantics<arbitrary>], iteration_bounds = array<i64: 1, 1>, scalar_prefetch = 0 : i64, scratch_operands = 0 : i64, tpu.core_type = #tpu.core_type<tc>, window_params = [{transform_indices = @transform_0, window_bounds = array<i64: 32, 128>}, {transform_indices = @transform_1, window_bounds = array<i64: 32, 128>}, {transform_indices = @transform_2, window_bounds = array<i64: 1, 8, 128>}]} {
    %c1_i32 = arith.constant 1 : i32
    %0 = arith.muli %arg0, %c1_i32 : i32
    %1 = arith.addi %0, %arg1 : i32
    %c0_i32 = arith.constant 0 : i32
    %2 = arith.cmpi eq, %arg1, %c0_i32 : i32
    %3 = arith.extui %2 : i1 to i32
    %c0_i32_0 = arith.constant 0 : i32
    %4 = arith.cmpi ne, %3, %c0_i32_0 : i32
    scf.if %4 {
      %cst_6 = arith.constant 0.000000e+00 : f32
      %14 = vector.broadcast %cst_6 : f32 to vector<1x8x128xf32>
      %c0_7 = arith.constant 0 : index
      %c0_8 = arith.constant 0 : index
      %c0_9 = arith.constant 0 : index
      %15 = vector.load %arg4[%c0_7, %c0_8, %c0_9] : memref<1x8x128xf32, #tpu.memory_space<vmem>>, vector<1x8x128xf32>
      tpu.vector_store %arg4[%c0_7, %c0_8, %c0_9], %14 {strides = array<i32>} : memref<1x8x128xf32, #tpu.memory_space<vmem>>, vector<1x8x128xf32>,
    } else {
    }
    %c0 = arith.constant 0 : index
    %c0_1 = arith.constant 0 : index
    %5 = vector.load %arg2[%c0, %c0_1] : memref<32x128xf32, #tpu.memory_space<vmem>>, vector<32x128xf32>
    %c0_2 = arith.constant 0 : index
    %c0_3 = arith.constant 0 : index
    %6 = vector.load %arg3[%c0_2, %c0_3] : memref<32x128xf32, #tpu.memory_space<vmem>>, vector<32x128xf32>
    %7 = arith.subf %5, %6 : vector<32x128xf32>
    %8 = math.absf %7 : vector<32x128xf32>
    %cst = arith.constant 1.000000e-16 : f32
    %9 = vector.broadcast %cst : f32 to vector<32x128xf32>
    %10 = arith.addf %8, %9 : vector<32x128xf32>
    %c0_i32_4 = arith.constant 0 : i32
    %11 = arith.cmpi sge, %1, %c0_i32_4 : i32
    %12 = arith.extui %11 : i1 to i32
    %c0_i32_5 = arith.constant 0 : i32
    %13 = arith.cmpi ne, %12, %c0_i32_5 : i32
    scf.if %13 {
      %c32_i32 = arith.constant 32 : i32
      %14 = arith.muli %1, %c32_i32 : i32
      %15 = tpu.iota {dimensions = array<i32: 0>} : vector<32x128xi32>
      %16 = vector.broadcast %14 : i32 to vector<32x128xi32>
      %17 = arith.addi %16, %15 : vector<32x128xi32>
      %c16_i32 = arith.constant 16 : i32
      %18 = vector.broadcast %c16_i32 : i32 to vector<32x128xi32>
      %19 = arith.cmpi slt, %17, %18 : vector<32x128xi32>
      %cst_6 = arith.constant 0.000000e+00 : f32
      %20 = vector.broadcast %cst_6 : f32 to vector<32x128xf32>
      %21 = arith.select %19, %10, %20 : vector<32x128xi1>, vector<32x128xf32>
      %cst_7 = arith.constant -2.000000e+00 : f32
      %22 = vector.broadcast %cst_7 : f32 to vector<32x128xf32>
      %23 = arith.mulf %22, %21 : vector<32x128xf32>
      %24 = math.exp %23 : vector<32x128xf32>
      %25 = math.log1p %24 : vector<32x128xf32>
      %26 = arith.addf %21, %25 : vector<32x128xf32>
      %cst_8 = arith.constant 0.693147182 : f32
      %27 = vector.broadcast %cst_8 : f32 to vector<32x128xf32>
      %28 = arith.subf %26, %27 : vector<32x128xf32>
      %cst_9 = arith.constant 0.000000e+00 : f32
      %29 = vector.broadcast %cst_9 : f32 to vector<32x128xf32>
      %30 = arith.select %19, %28, %29 : vector<32x128xi1>, vector<32x128xf32>
      %c0_10 = arith.constant 0 : index
      %c0_11 = arith.constant 0 : index
      %c0_12 = arith.constant 0 : index
      %31 = vector.load %arg4[%c0_10, %c0_11, %c0_12] : memref<1x8x128xf32, #tpu.memory_space<vmem>>, vector<1x8x128xf32>
      %32 = vector.shape_cast %30 : vector<32x128xf32> to vector<4x8x128xf32>
      %cst_13 = arith.constant dense<0.000000e+00> : vector<8x128xf32>
      %33 = vector.multi_reduction <add>, %32, %cst_13 [0] : vector<4x8x128xf32> to vector<8x128xf32>
      %34 = vector.shape_cast %33 : vector<8x128xf32> to vector<1x8x128xf32>
      %35 = arith.addf %31, %34 : vector<1x8x128xf32>
      %c0_14 = arith.constant 0 : index
      %c0_15 = arith.constant 0 : index
      %c0_16 = arith.constant 0 : index
      %36 = vector.load %arg4[%c0_14, %c0_15, %c0_16] : memref<1x8x128xf32, #tpu.memory_space<vmem>>, vector<1x8x128xf32>
      tpu.vector_store %arg4[%c0_14, %c0_15, %c0_16], %35 {strides = array<i32>} : memref<1x8x128xf32, #tpu.memory_space<vmem>>, vector<1x8x128xf32>,
    } else {
    }
    return
  }
  func.func @transform_0(%arg0: i32, %arg1: i32) -> (i32, i32) {
    %c1_i32 = arith.constant 1 : i32
    %0 = arith.muli %arg0, %c1_i32 : i32
    %1 = arith.addi %0, %arg1 : i32
    %c0_i32 = arith.constant 0 : i32
    %2 = arith.minsi %1, %c0_i32 : i32
    %c0_i32_0 = arith.constant 0 : i32
    %c0_i32_1 = arith.constant 0 : i32
    return %2, %c0_i32_0 : i32, i32
  }
  func.func @transform_1(%arg0: i32, %arg1: i32) -> (i32, i32) {
    %c1_i32 = arith.constant 1 : i32
    %0 = arith.muli %arg0, %c1_i32 : i32
    %1 = arith.addi %0, %arg1 : i32
    %c0_i32 = arith.constant 0 : i32
    %2 = arith.minsi %1, %c0_i32 : i32
    %c0_i32_0 = arith.constant 0 : i32
    %c0_i32_1 = arith.constant 0 : i32
    return %2, %c0_i32_0 : i32, i32
  }
  func.func @transform_2(%arg0: i32, %arg1: i32) -> (i32, i32, i32) {
    %c0_i32 = arith.constant 0 : i32
    %c0_i32_0 = arith.constant 0 : i32
    %c0_i32_1 = arith.constant 0 : i32
    return %arg0, %c0_i32, %c0_i32_0 : i32, i32, i32
  }
}

</mosaic_0001>

<bundles_post_ra>
// kernel: tpu_custom_call.1
= control target key start
LH: loop header
LB: loop body
LE: loop exit
PB: predicated region body
PF: predicated region fallthrough
CT: control target
= control target key end

     0   :  { %7 = vsyncpa [#allocation3], 0  ;;  %s351_s0 = inlined_call_operand.hbm [shape: f32[16,128], index: 0, kind: input, shape index: {}]   ;;  %s352_s1 = inlined_call_operand.hbm [shape: f32[16,128], index: 1, kind: input, shape index: {}]   ;;  %s353_s2 = inlined_call_operand.hbm [shape: f32[1,8,128], index: 2, kind: output, shape index: {}]  }
   0x1   :  { %8 = vsyncpa [#allocation6], 0 }
   0x2   :  { %9 = vsyncpa [#allocation4], 0 }
   0x3   :  { %20 = vsyncadd [#allocation3], 256  ;;  %s295_s9 = smov [#allocation2]   ;;  %s223_s13 = scalar_lea.hbm %s351_s0, 256 }
   0x4   :  { %s25_s10 = sshll.u32 %s295_s9, 4  ;;  %p224_p0 = scmp.ne.s32.totalorder %s351_s0, %s223_s13  ;;  %s26_s10 = int_to_ptr.vmem [resolvable:$true] %s25_s10 }
   0x5   :  { %p227_p1 = scmp.lt.u32.totalorder %s223_s13, %s351_s0 }
   0x7   :  { %p229_p2 = pnand %p227_p1, %p224_p0 }
   0x9   :  { %232 = shalt.err (!%p229_p2)
}
   0xa   :  { %s233_s18 = scalar_lea.vmem %s26_s10, 256  ;;  %s237_s19 = scalar_lea.vmem %s26_s10, 512 }
   0xb   :  { %p234_p3 = scmp.ne.s32.totalorder %s26_s10, %s233_s18  ;;  %p238_p4 = scmp.lt.s32.totalorder %s26_s10, %s26_s10 }
   0xc   :  { %p239_p5 = scmp.lt.s32.totalorder %s237_s19, %s233_s18 }
   0xe   :  { %p240_p6 = por %p239_p5, %p238_p4 }
  0x10   :  { %p241_p7 = pnand %p240_p6, %p234_p3 }
  0x12   :  { %244 = shalt.err (!%p241_p7)
}
  0x13   :  { %s296_s20 = smov 128   ;;  %s297_s21 = smov 8  }
  0x14   :  { %31 = dma.hbm_to_vmem [thread:$0]  %s351_s0, 256, %s26_s10, [#allocation3], %s296_s20, %s296_s20, %s297_s21  }
  0x15   :  { %42 = vsyncadd [#allocation6], 256  ;;  %s298_s24 = smov [#allocation5]   ;;  %s245_s28 = scalar_lea.hbm %s352_s1, 256 }
  0x16   :  { %s47_s25 = sshll.u32 %s298_s24, 4  ;;  %p246_p8 = scmp.ne.s32.totalorder %s352_s1, %s245_s28  ;;  %s48_s25 = int_to_ptr.vmem [resolvable:$true] %s47_s25 }
  0x17   :  { %p249_p9 = scmp.lt.u32.totalorder %s245_s28, %s352_s1 }
  0x19   :  { %p251_p10 = pnand %p249_p9, %p246_p8 }
  0x1b   :  { %254 = shalt.err (!%p251_p10)
}
  0x1c   :  { %s255_s5 = scalar_lea.vmem %s48_s25, 256  ;;  %s259_s0 = scalar_lea.vmem %s48_s25, 512 }
  0x1d   :  { %p256_p11 = scmp.ne.s32.totalorder %s48_s25, %s255_s5  ;;  %p260_p12 = scmp.lt.s32.totalorder %s48_s25, %s48_s25 }
  0x1e   :  { %p261_p13 = scmp.lt.s32.totalorder %s259_s0, %s255_s5 }
  0x20   :  { %p262_p0 = por %p261_p13, %p260_p12 }
  0x22   :  { %p263_p1 = pnand %p262_p0, %p256_p11 }
  0x24   :  { %266 = shalt.err (!%p263_p1)
}
  0x25   :  { %53 = dma.hbm_to_vmem [thread:$0]  %s352_s1, 256, %s48_s25, [#allocation6], %s296_s20, %s296_s20, %s297_s21  }
  0x26   :  { %289 = dma.done.wait [#allocation3], 512  }
  0x27   :  { %290 = vsyncadd [#allocation3], 4294966784 }
  0x28   :  { %291 = dma.done.wait [#allocation6], 512  }
  0x29   :  { %292 = vsyncadd [#allocation6], 4294966784  ;;  %v78_v0 = vld [vmem:[#allocation2] sm:$0xff]  ;;  %v79_v1 = vld [vmem:[#allocation2 + $0x8] sm:$0xff]  ;;  %s299_s1 = smov [#allocation7]  }
  0x2a   :  { %v82_v2 = vld [vmem:[#allocation5] sm:$0xff]  ;;  %v83_v3 = vld [vmem:[#allocation5 + $0x8] sm:$0xff]  ;;  %s193_s8 = sshll.u32 %s299_s1, 4  ;;  %s194_s8 = int_to_ptr.vmem [resolvable:$true] %s193_s8 }
  0x2b   :  { %v86_v4 = vsub.f32 %v78_v0, %v82_v2  ;;  %v87_v5 = vsub.f32 %v79_v1, %v83_v3  ;;  %s267_s9 = scalar_lea.vmem %s194_s8, 128  ;;  %p272_p3 = scmp.lt.s32.totalorder %s194_s8, %s194_s8 }
  0x2c   :  { %p268_p2 = scmp.ne.s32.totalorder %s194_s8, %s267_s9  ;;  %p273_p4 = scmp.lt.s32.totalorder %s267_s9, %s267_s9 }
  0x2d   :  { %v90_v6 = vand.u32 2147483647, %v86_v4  ;;  %v91_v7 = vand.u32 2147483647, %v87_v5 }
  0x2e   :  { %p274_p5 = por %p273_p4, %p272_p3 }
  0x2f   :  { %v94_v8 = vadd.f32 1e-16, %v90_v6  ;;  %v95_v9 = vadd.f32 1e-16, %v91_v7 }
  0x30   :  { %p275_p6 = pnand %p274_p5, %p268_p2 }
  0x31   :  { %v121_v10 = vmul.f32 -2.0, %v94_v8  ;;  %v122_v11 = vmul.f32 -2.0, %v95_v9 }
  0x33   :  { %v125_v12 = vmul.f32 1.442695, %v121_v10  ;;  %v127_v13 = vmul.f32 1.442695, %v122_v11 }
  0x35   :  { %215 = vpow2.f32 %v125_v12 }
  0x36   :  { %217 = vpow2.f32 %v127_v13 }
  0x3f   :  { %v216_v14 = vpop.eup %215 }
  0x40   :  { %v218_v15 = vpop.eup %217  ;;  %v133_v16 = vadd.f32 1.0, %v216_v14  ;;  %v136_v18 = vmul.f32 -0.5, %v216_v14  ;;  %v139_v21 = vand.u32 2147483647, %v216_v14 }
  0x41   :  { %v142_v17 = vadd.f32 1.0, %v218_v15  ;;  %v145_v19 = vmul.f32 -0.5, %v218_v15  ;;  %v148_v23 = vand.u32 2147483647, %v218_v15 }
  0x42   :  { %219 = vlog2.f32 %v133_v16  ;;  %v137_v20 = vadd.f32 1.0, %v136_v18  ;;  %vm140_vm0 = vcmp.lt.f32.partialorder %v139_v21, 0.0004427343 }
  0x43   :  { %221 = vlog2.f32 %v142_v17  ;;  %v146_v22 = vadd.f32 1.0, %v145_v19  ;;  %vm149_vm1 = vcmp.lt.f32.partialorder %v148_v23, 0.0004427343 }
  0x44   :  { %v138_v24 = vmul.f32 %v216_v14, %v137_v20 }
  0x45   :  { %v147_v26 = vmul.f32 %v218_v15, %v146_v22 }
  0x4c   :  { %v220_v25 = vpop.eup %219 }
  0x4d   :  { %v222_v27 = vpop.eup %221  ;;  %v135_v28 = vmul.f32 0.6931472, %v220_v25 }
  0x4e   :  { %v144_v29 = vmul.f32 0.6931472, %v222_v27 }
  0x4f   :  { %v141_v30 = vsel %vm140_vm0, %v138_v24, %v135_v28 }
  0x50   :  { %v150_v31 = vsel %vm149_vm1, %v147_v26, %v144_v29  ;;  %v169_v32 = vadd.f32 %v141_v30, %v94_v8 }
  0x51   :  { %v170_v33 = vadd.f32 %v150_v31, %v95_v9 }
  0x52   :  { %v207_v34 = vadd.f32 -0.6931472, %v169_v32 }
  0x53   :  { %v208_v35 = vadd.f32 -0.6931472, %v170_v33 }
  0x55   :  { %v182_v36 = vadd.f32 %v208_v35, %v207_v34 }
  0x57   :  { %186 = vst [vmem:[#allocation7] sm:$0xff] %v182_v36 }
  0x58   :  { %278 = shalt.err (!%p275_p6)
}
  0x59   :  { %s279_s12 = scalar_lea.hbm %s353_s2, 128 }
  0x5a   :  { %p280_p7 = scmp.ne.s32.totalorder %s353_s2, %s279_s12  ;;  %p283_p8 = scmp.lt.u32.totalorder %s279_s12, %s353_s2 }
  0x5c   :  { %p285_p9 = pnand %p283_p8, %p280_p7 }
  0x5e   :  { %288 = shalt.err (!%p285_p9)
}
  0x5f   :  { %196 = dma.vmem_to_hbm [thread:$0]  %s194_s8, 128, %s353_s2, [#allocation4]  }
  0x60   :  { %293 = dma.done.wait [#allocation4], 128  }
  0x61   :  { %294 = vsyncadd [#allocation4], 4294967168 }
  0x62   :  { %200 = vsyncpa [#allocation3], 1 }
  0x63   :  { %201 = vsyncpa [#allocation6], 1 }
  0x64   :  { %202 = vsyncpa [#allocation4], 1 }

</bundles_post_ra>
